<compile_context>
chip_gen: v7x
topology: tpu7x:2x2x1
jax: 0.10.0
libtpu: 0.0.40
codegen_flags: <defaults>
</compile_context>

<pallas_src>
import functools

import jax
import jax.numpy as jnp
from jax.experimental import pallas as pl
from jax.experimental.pallas import tpu as pltpu


# -----------------------------------------------------------------------------
# Shared in-kernel cell body (used by the per-step and fused-decode kernels)
# -----------------------------------------------------------------------------
def _updown_cell_body(prefix, st, img, proj_img, mask,
                      w_lstm_ref, b_ref, w_qatt_ref, *, H, D1, D2, mm_dtype):
    f32 = jnp.float32
    h1 = st[:, 0 * H:1 * H]
    c1 = st[:, 1 * H:2 * H]
    h2 = st[:, 2 * H:3 * H]
    c2 = st[:, 3 * H:4 * H]

    # Static sublane slices of the packed weight slabs.
    w1 = w_lstm_ref[0:D1, :].astype(mm_dtype)        # merged W_ih1 (+W_hh1)
    w2 = w_lstm_ref[D1:D1 + D2, :].astype(mm_dtype)  # merged W_ih2 (+W_hh2)
    b1 = b_ref[0:1, :]
    b2 = b_ref[1:2, :]
    w_q = w_qatt_ref[0:H, :].astype(mm_dtype)        # (H, P)
    w_att = w_qatt_ref[H:H + 1, :]                   # (1, P)

    def lstm(x_cat, w, b, c_prev):
        # Single MXU matmul per LSTM cell (gate order i, f, g, o).
        acc = jnp.dot(x_cat.astype(mm_dtype), w,
                      preferred_element_type=f32) + b          # (B, 4H)
        # Intentional: sigmoid/tanh evaluated over the full 4H lanes (one EUP
        # issue each); unused gate lanes of each are sliced away below.  At
        # tiny H this is free filler; re-slice per-gate only if EUP saturates.
        sig = jax.nn.sigmoid(acc)
        tnh = jnp.tanh(acc)
        i_g = sig[:, 0 * H:1 * H]
        f_g = sig[:, 1 * H:2 * H]
        g_g = tnh[:, 2 * H:3 * H]
        o_g = sig[:, 3 * H:4 * H]
        c_new = f_g * c_prev + i_g * g_g
        h_new = o_g * jnp.tanh(c_new)
        return h_new, c_new

    # ---- Attention LSTM -----------------------------------------------------
    # prefix = [token_embedding || avg_img] was pre-concatenated lane-dense in
    # the wrapper, so only 3 pieces are concatenated here.
    x1 = jnp.concatenate([prefix, h1, h2], axis=1)             # (B, D1)
    h1n, c1n = lstm(x1, w1, b1, c1)

    # ---- Bottom-up top-down attention (img projection precomputed) -----------
    proj_q = jnp.dot(h1n.astype(mm_dtype), w_q,
                     preferred_element_type=f32)               # (B, P)
    att_hidden = jnp.tanh(proj_img + proj_q[:, None, :])       # (B, N, P)
    # Width-1 MXU matmul replaced by VPU multiply + XLU lane reduce.
    logits = jnp.sum(att_hidden * w_att, axis=-1)              # (B, N)

    # AllenNLP masked_softmax (default, non memory-efficient branch).
    probs = jax.nn.softmax(logits * mask, axis=-1)
    probs = probs * mask
    probs = probs / (jnp.sum(probs, axis=-1, keepdims=True) + 1e-13)
    attended = jnp.sum(probs[:, :, None] * img, axis=1)        # (B, F)

    # ---- Language LSTM --------------------------------------------------------
    x2 = jnp.concatenate([attended, h1n, h2], axis=1)          # (B, D2)
    h2n, c2n = lstm(x2, w2, b2, c2)
    return h1n, c1n, h2n, c2n


# -----------------------------------------------------------------------------
# Per-step kernel (module forward() semantics)
# -----------------------------------------------------------------------------
def updown_step_kernel(prefix_ref, state_ref, img_ref, pimg_ref, mask_ref,
                       w_lstm_ref, b_ref, w_qatt_ref, out_ref,
                       *, H, D1, D2, mm_dtype):
    f32 = jnp.float32
    h1n, c1n, h2n, c2n = _updown_cell_body(
        prefix_ref[...].astype(f32), state_ref[...].astype(f32),
        img_ref[...].astype(f32), pimg_ref[...].astype(f32),
        mask_ref[...].astype(f32),
        w_lstm_ref, b_ref, w_qatt_ref, H=H, D1=D1, D2=D2, mm_dtype=mm_dtype)
    # Single lane-dense (B, 4H) store; the output HBM buffer is the aliased
    # state input (in-place state update).
    out_ref[...] = jnp.concatenate([h1n, c1n, h2n, c2n],
                                   axis=1).astype(out_ref.dtype)


# -----------------------------------------------------------------------------
# Fused decode-loop kernel: grid=(T,), weights/image-context VMEM-resident,
# state carried in a VMEM scratch across timesteps.
# -----------------------------------------------------------------------------
def updown_decode_kernel(prefix_ref, state0_ref, img_ref, pimg_ref, mask_ref,
                         w_lstm_ref, b_ref, w_qatt_ref, out_ref, state_sc,
                         *, H, D1, D2, mm_dtype):
    f32 = jnp.float32
    t = pl.program_id(0)

    @pl.when(t == 0)
    def _():
        state_sc[...] = state0_ref[...].astype(f32)

    h1n, c1n, h2n, c2n = _updown_cell_body(
        prefix_ref[0].astype(f32), state_sc[...],
        img_ref[...].astype(f32), pimg_ref[...].astype(f32),
        mask_ref[...].astype(f32),
        w_lstm_ref, b_ref, w_qatt_ref, H=H, D1=D1, D2=D2, mm_dtype=mm_dtype)

    new_state = jnp.concatenate([h1n, c1n, h2n, c2n], axis=1)  # (B, 4H)
    state_sc[...] = new_state
    out_ref[0] = new_state.astype(out_ref.dtype)               # lane-dense store


# -----------------------------------------------------------------------------
# Parameter packing: fold W_hh into the h_prev rows of W_ih, build the slabs.
# -----------------------------------------------------------------------------
def pack_params(params, *, E, F, H):
    # Attention LSTM input = [tok(E), avg(F), h1(H), h2(H)]; h_prev = h1 lives
    # at rows [E+F : E+F+H] of the concat.
    w1 = params["w_ih1"].at[E + F:E + F + H, :].add(params["w_hh1"])
    # Language LSTM input = [attended(F), h1n(H), h2(H)]; h_prev = h2 lives at
    # rows [F+H : F+2H].
    w2 = params["w_ih2"].at[F + H:F + 2 * H, :].add(params["w_hh2"])
    return {
        "w_lstm": jnp.concatenate([w1, w2], axis=0),               # (D1+D2, 4H)
        "b": jnp.concatenate([params["b1"], params["b2"]], axis=0),  # (2, 4H)
        "w_qatt": jnp.concatenate([params["w_q"],
                                   params["w_att"].T], axis=0),    # (H+1, P)
        "w_img": params["w_img"],                                  # (F, P) (precompute only)
    }


# -----------------------------------------------------------------------------
# Step-invariant per-caption work (analogue of the module's lru_cache):
# box mask, masked mean pool, and the attention image projection.
# -----------------------------------------------------------------------------
def precompute_image_context(image_features, w_img):
    # NOTE: a genuinely valid box whose feature vector is all zeros is treated
    # as padding -- same semantics as the PyTorch reference.
    mask = (jnp.sum(jnp.abs(image_features), axis=-1) > 0).astype(jnp.float32)
    count = jnp.maximum(jnp.sum(mask, axis=1, keepdims=True), 1e-8)
    avg_img = jnp.sum(image_features * mask[:, :, None], axis=1) / count
    proj_img = jnp.einsum("bnf,fp->bnp", image_features, w_img)
    return mask, avg_img, proj_img


def _pad_batch(x, b_pad):
    pad = b_pad - x.shape[0]
    if pad:
        x = jnp.pad(x, ((0, pad),) + ((0, 0),) * (x.ndim - 1))
    return x


# -----------------------------------------------------------------------------
# Per-step wrapper (UpDownCell.forward semantics)
# -----------------------------------------------------------------------------
def updown_cell(image_features, token_embedding, states, packed, *,
                hidden_size, attention_projection_size,
                matmul_dtype=jnp.float32):
    """Pallas implementation of UpDownCell.forward. Returns (h2, new_states)."""
    B, N, F = image_features.shape
    E = token_embedding.shape[1]
    H = hidden_size
    P = attention_projection_size
    D1 = E + F + 2 * H
    D2 = F + 2 * H
    B_pad = max(8, ((B + 7) // 8) * 8)

    img = _pad_batch(image_features, B_pad)
    tok = _pad_batch(token_embedding, B_pad)

    mask, avg_img, proj_img = precompute_image_context(img, packed["w_img"])
    prefix = jnp.concatenate([tok, avg_img], axis=1)           # (B_pad, E+F)

    if states is None:
        state_packed = jnp.zeros((B_pad, 4 * H), jnp.float32)
    else:
        state_packed = _pad_batch(
            jnp.concatenate([states["h1"], states["c1"],
                             states["h2"], states["c2"]], axis=1), B_pad)

    kernel = functools.partial(updown_step_kernel, H=H, D1=D1, D2=D2,
                               mm_dtype=matmul_dtype)

    flops = (2 * B_pad * (D1 + D2) * 4 * H + 2 * B_pad * H * P
             + B_pad * N * (3 * P + 3 * F))
    transcendentals = B_pad * (4 * 4 * H + N * P + N)
    bytes_accessed = 4 * (B_pad * (E + F) + 2 * B_pad * 4 * H
                          + B_pad * N * (F + P + 1)
                          + (D1 + D2 + 2) * 4 * H + (H + 1) * P)

    vmem = pl.BlockSpec(memory_space=pltpu.MemorySpace.VMEM)
    out = pl.pallas_call(
        kernel,
        out_shape=jax.ShapeDtypeStruct((B_pad, 4 * H), jnp.float32),
        in_specs=[vmem] * 8,
        out_specs=vmem,
        input_output_aliases={1: 0},   # state_packed -> output (in-place)
        cost_estimate=pl.CostEstimate(flops=int(flops),
                                      transcendentals=int(transcendentals),
                                      bytes_accessed=int(bytes_accessed)),
    )(prefix, state_packed, img, proj_img, mask,
      packed["w_lstm"], packed["b"], packed["w_qatt"])

    out = out[:B]
    new_states = {"h1": out[:, 0 * H:1 * H], "c1": out[:, 1 * H:2 * H],
                  "h2": out[:, 2 * H:3 * H], "c2": out[:, 3 * H:4 * H]}
    return new_states["h2"], new_states


# -----------------------------------------------------------------------------
# Fused T-step decode wrapper (teacher-forced / precomputed token embeddings)
# -----------------------------------------------------------------------------
def updown_decode(image_features, token_embeddings, states, packed, *,
                  hidden_size, attention_projection_size,
                  matmul_dtype=jnp.float32):
    """Runs T UpDownCell steps inside one pallas_call.

    token_embeddings: (T, B, E). Returns (h2_seq (T, B, H), final states)."""
    T, B, E = token_embeddings.shape
    _, N, F = image_features.shape
    H = hidden_size
    P = attention_projection_size
    D1 = E + F + 2 * H
    D2 = F + 2 * H
    B_pad = max(8, ((B + 7) // 8) * 8)

    img = _pad_batch(image_features, B_pad)
    tok_seq = token_embeddings
    if B_pad != B:
        tok_seq = jnp.pad(tok_seq, ((0, 0), (0, B_pad - B), (0, 0)))

    mask, avg_img, proj_img = precompute_image_context(img, packed["w_img"])
    # Step-invariant avg_img pre-concatenated lane-dense with each step's token.
    prefix_seq = jnp.concatenate(
        [tok_seq, jnp.broadcast_to(avg_img[None], (T, B_pad, F))], axis=-1)

    if states is None:
        state0 = jnp.zeros((B_pad, 4 * H), jnp.float32)
    else:
        state0 = _pad_batch(
            jnp.concatenate([states["h1"], states["c1"],
                             states["h2"], states["c2"]], axis=1), B_pad)

    kernel = functools.partial(updown_decode_kernel, H=H, D1=D1, D2=D2,
                               mm_dtype=matmul_dtype)

    flops = T * (2 * B_pad * (D1 + D2) * 4 * H + 2 * B_pad * H * P
                 + B_pad * N * (3 * P + 3 * F))
    transcendentals = T * B_pad * (4 * 4 * H + N * P + N)
    bytes_accessed = 4 * (T * B_pad * (E + F) + T * B_pad * 4 * H
                          + B_pad * 4 * H + B_pad * N * (F + P + 1)
                          + (D1 + D2 + 2) * 4 * H + (H + 1) * P)

    grid_spec = pltpu.PrefetchScalarGridSpec(
        num_scalar_prefetch=0,
        grid=(T,),
        in_specs=[
            pl.BlockSpec((1, B_pad, E + F), lambda t: (t, 0, 0)),  # per-step prefix
            pl.BlockSpec((B_pad, 4 * H), lambda t: (0, 0)),        # initial state
            pl.BlockSpec((B_pad, N, F), lambda t: (0, 0, 0)),      # image feats (resident)
            pl.BlockSpec((B_pad, N, P), lambda t: (0, 0, 0)),      # proj_img (resident)
            pl.BlockSpec((B_pad, N), lambda t: (0, 0)),            # box mask (resident)
            pl.BlockSpec((D1 + D2, 4 * H), lambda t: (0, 0)),      # LSTM slab (resident)
            pl.BlockSpec((2, 4 * H), lambda t: (0, 0)),            # biases (resident)
            pl.BlockSpec((H + 1, P), lambda t: (0, 0)),            # attn slab (resident)
        ],
        out_specs=pl.BlockSpec((1, B_pad, 4 * H), lambda t: (t, 0, 0)),
        scratch_shapes=[pltpu.VMEM((B_pad, 4 * H), jnp.float32)],  # carried state
    )

    state_seq = pl.pallas_call(
        kernel,
        out_shape=jax.ShapeDtypeStruct((T, B_pad, 4 * H), jnp.float32),
        grid_spec=grid_spec,
        compiler_params=pltpu.CompilerParams(
            dimension_semantics=("arbitrary",)),
        cost_estimate=pl.CostEstimate(flops=int(flops),
                                      transcendentals=int(transcendentals),
                                      bytes_accessed=int(bytes_accessed)),
    )(prefix_seq, state0, img, proj_img, mask,
      packed["w_lstm"], packed["b"], packed["w_qatt"])

    h2_seq = state_seq[:, :B, 2 * H:3 * H]
    final = state_seq[-1, :B]
    new_states = {"h1": final[:, 0 * H:1 * H], "c1": final[:, 1 * H:2 * H],
                  "h2": final[:, 2 * H:3 * H], "c2": final[:, 3 * H:4 * H]}
    return h2_seq, new_states


# -----------------------------------------------------------------------------
# Deterministic parameter init (mirrors nn.LSTMCell / nn.Linear shapes;
# stored transposed as (in_dim, out_dim); b = b_ih + b_hh folded together).
# -----------------------------------------------------------------------------
def init_params(key, image_feature_size, embedding_size, hidden_size,
                attention_projection_size):
    F, E, H, P = (image_feature_size, embedding_size, hidden_size,
                  attention_projection_size)
    d1 = E + F + 2 * H
    d2 = F + 2 * H
    k = 1.0 / jnp.sqrt(jnp.float32(H))
    keys = jax.random.split(key, 9)

    def u(kk, shape, scale):
        return jax.random.uniform(kk, shape, jnp.float32, -scale, scale)

    return {
        "w_ih1": u(keys[0], (d1, 4 * H), k),
        "w_hh1": u(keys[1], (H, 4 * H), k),
        "b1": u(keys[2], (1, 4 * H), k),
        "w_img": u(keys[3], (F, P), 1.0 / jnp.sqrt(jnp.float32(F))),
        "w_q": u(keys[4], (H, P), k),
        "w_att": u(keys[5], (P, 1), 1.0 / jnp.sqrt(jnp.float32(P))),
        "w_ih2": u(keys[6], (d2, 4 * H), k),
        "w_hh2": u(keys[7], (H, 4 * H), k),
        "b2": u(keys[8], (1, 4 * H), k),
    }


# -----------------------------------------------------------------------------
# Pure-JAX reference (mirrors the PyTorch forward exactly, unmerged weights)
# -----------------------------------------------------------------------------
def reference_updown_cell(img, tok, states, params, H):
    mask = (jnp.sum(jnp.abs(img), axis=-1) > 0).astype(jnp.float32)
    avg = jnp.sum(img * mask[:, :, None], axis=1) / jnp.maximum(
        jnp.sum(mask, axis=1, keepdims=True), 1e-8)

    def lstm(x, h, c, w_ih, w_hh, b):
        g = x @ w_ih + h @ w_hh + b
        i = jax.nn.sigmoid(g[:, :H])
        f = jax.nn.sigmoid(g[:, H:2 * H])
        gg = jnp.tanh(g[:, 2 * H:3 * H])
        o = jax.nn.sigmoid(g[:, 3 * H:])
        c_n = f * c + i * gg
        return o * jnp.tanh(c_n), c_n

    x1 = jnp.concatenate([tok, avg, states["h1"], states["h2"]], axis=1)
    h1n, c1n = lstm(x1, states["h1"], states["c1"],
                    params["w_ih1"], params["w_hh1"], params["b1"])

    proj_q = h1n @ params["w_q"]
    proj_img = jnp.einsum("bnf,fp->bnp", img, params["w_img"])
    logits = jnp.einsum("bnp,pk->bnk", jnp.tanh(proj_img + proj_q[:, None, :]),
                        params["w_att"])[..., 0]
    probs = jax.nn.softmax(logits * mask, axis=-1) * mask
    probs = probs / (jnp.sum(probs, axis=-1, keepdims=True) + 1e-13)
    attended = jnp.sum(probs[:, :, None] * img, axis=1)

    x2 = jnp.concatenate([attended, h1n, states["h2"]], axis=1)
    h2n, c2n = lstm(x2, states["h2"], states["c2"],
                    params["w_ih2"], params["w_hh2"], params["b2"])
    return h2n, {"h1": h1n, "c1": c1n, "h2": h2n, "c2": c2n}


# -----------------------------------------------------------------------------
if __name__ == "__main__":
    B, N = 4, 8                     # batch, num_boxes
    F, E, H, P = 64, 32, 32, 32     # image_feature, embedding, hidden, attn proj
    T = 6                           # decode steps for the fused kernel

    root = jax.random.PRNGKey(0)
    (k_img, k_tok, k_h1, k_c1, k_h2, k_c2, k_par,
     k_tokseq) = jax.random.split(root, 8)

    image_features = jax.random.normal(k_img, (B, N, F), jnp.float32)
    # emulate adaptive features: pad out some boxes with zeros per instance
    valid_boxes = jnp.array([8, 5, 3, 6])
    box_mask = (jnp.arange(N)[None, :] < valid_boxes[:, None]).astype(jnp.float32)
    image_features = image_features * box_mask[:, :, None]

    token_embedding = jax.random.normal(k_tok, (B, E), jnp.float32)
    states = {
        "h1": 0.1 * jax.random.normal(k_h1, (B, H), jnp.float32),
        "c1": 0.1 * jax.random.normal(k_c1, (B, H), jnp.float32),
        "h2": 0.1 * jax.random.normal(k_h2, (B, H), jnp.float32),
        "c2": 0.1 * jax.random.normal(k_c2, (B, H), jnp.float32),
    }
    params = init_params(k_par, F, E, H, P)
    packed = pack_params(params, E=E, F=F, H=H)

    # ---- per-step kernel (module forward() semantics) -----------------------
    h2_out, new_states = updown_cell(
        image_features, token_embedding, states, packed,
        hidden_size=H, attention_projection_size=P)
    jax.block_until_ready(h2_out)

    h2_ref, ref_states = reference_updown_cell(image_features, token_embedding,
                                               states, params, H)
    for name in ("h1", "c1", "h2", "c2"):
        assert jnp.allclose(new_states[name], ref_states[name],
                            atol=1e-5, rtol=1e-5), f"step mismatch in {name}"
    assert jnp.allclose(h2_out, h2_ref, atol=1e-5, rtol=1e-5)

    # ---- fused decode-loop kernel -------------------------------------------
    tok_seq = jax.random.normal(k_tokseq, (T, B, E), jnp.float32)
    h2_seq, dec_states = updown_decode(
        image_features, tok_seq, states, packed,
        hidden_size=H, attention_projection_size=P)
    jax.block_until_ready(h2_seq)

    st = states
    ref_h2 = []
    for t in range(T):
        h2_t, st = reference_updown_cell(image_features, tok_seq[t], st,
                                         params, H)
        ref_h2.append(h2_t)
    ref_h2_seq = jnp.stack(ref_h2, axis=0)

    assert jnp.allclose(h2_seq, ref_h2_seq, atol=1e-4, rtol=1e-4), \
        "decode h2 sequence mismatch"
    for name in ("h1", "c1", "h2", "c2"):
        assert jnp.allclose(dec_states[name], st[name],
                            atol=1e-4, rtol=1e-4), f"decode mismatch in {name}"

    print("KERNEL_OK")
</pallas_src>

<mosaic_0001>
module attributes {stable_mosaic.version = 11 : i64} {
  func.func @updown_step_kernel(%arg0: memref<8x96xf32, #tpu.memory_space<vmem>>, %arg1: memref<8x128xf32, #tpu.memory_space<vmem>>, %arg2: memref<8x8x64xf32, #tpu.memory_space<vmem>>, %arg3: memref<8x8x32xf32, #tpu.memory_space<vmem>>, %arg4: memref<8x8xf32, #tpu.memory_space<vmem>>, %arg5: memref<288x128xf32, #tpu.memory_space<vmem>>, %arg6: memref<2x128xf32, #tpu.memory_space<vmem>>, %arg7: memref<33x32xf32, #tpu.memory_space<vmem>>, %arg8: memref<8x128xf32, #tpu.memory_space<vmem>>) attributes {dimension_semantics = [], scalar_prefetch = 0 : i64, scratch_operands = 0 : i64, tpu.core_type = #tpu.core_type<tc>} {
    %c0 = arith.constant 0 : index
    %c0_0 = arith.constant 0 : index
    %0 = vector.load %arg0[%c0, %c0_0] : memref<8x96xf32, #tpu.memory_space<vmem>>, vector<8x96xf32>
    %c0_1 = arith.constant 0 : index
    %c0_2 = arith.constant 0 : index
    %1 = vector.load %arg1[%c0_1, %c0_2] : memref<8x128xf32, #tpu.memory_space<vmem>>, vector<8x128xf32>
    %c0_3 = arith.constant 0 : index
    %c0_4 = arith.constant 0 : index
    %c0_5 = arith.constant 0 : index
    %2 = vector.load %arg2[%c0_3, %c0_4, %c0_5] : memref<8x8x64xf32, #tpu.memory_space<vmem>>, vector<8x8x64xf32>
    %c0_6 = arith.constant 0 : index
    %c0_7 = arith.constant 0 : index
    %c0_8 = arith.constant 0 : index
    %3 = vector.load %arg3[%c0_6, %c0_7, %c0_8] : memref<8x8x32xf32, #tpu.memory_space<vmem>>, vector<8x8x32xf32>
    %c0_9 = arith.constant 0 : index
    %c0_10 = arith.constant 0 : index
    %4 = vector.load %arg4[%c0_9, %c0_10] : memref<8x8xf32, #tpu.memory_space<vmem>>, vector<8x8xf32>
    %5 = vector.extract_strided_slice %1 {offsets = [0, 0], sizes = [8, 32], strides = [1, 1]} : vector<8x128xf32> to vector<8x32xf32>
    %6 = vector.extract_strided_slice %1 {offsets = [0, 32], sizes = [8, 32], strides = [1, 1]} : vector<8x128xf32> to vector<8x32xf32>
    %7 = vector.extract_strided_slice %1 {offsets = [0, 64], sizes = [8, 32], strides = [1, 1]} : vector<8x128xf32> to vector<8x32xf32>
    %8 = vector.extract_strided_slice %1 {offsets = [0, 96], sizes = [8, 32], strides = [1, 1]} : vector<8x128xf32> to vector<8x32xf32>
    %c0_11 = arith.constant 0 : index
    %c0_12 = arith.constant 0 : index
    %9 = vector.load %arg5[%c0_11, %c0_12] : memref<288x128xf32, #tpu.memory_space<vmem>>, vector<160x128xf32>
    %c160 = arith.constant 160 : index
    %c0_13 = arith.constant 0 : index
    %10 = vector.load %arg5[%c160, %c0_13] : memref<288x128xf32, #tpu.memory_space<vmem>>, vector<128x128xf32>
    %c0_14 = arith.constant 0 : index
    %c0_15 = arith.constant 0 : index
    %11 = vector.load %arg6[%c0_14, %c0_15] : memref<2x128xf32, #tpu.memory_space<vmem>>, vector<1x128xf32>
    %c1 = arith.constant 1 : index
    %c0_16 = arith.constant 0 : index
    %12 = vector.load %arg6[%c1, %c0_16] : memref<2x128xf32, #tpu.memory_space<vmem>>, vector<1x128xf32>
    %c0_17 = arith.constant 0 : index
    %c0_18 = arith.constant 0 : index
    %13 = vector.load %arg7[%c0_17, %c0_18] : memref<33x32xf32, #tpu.memory_space<vmem>>, vector<32x32xf32>
    %c32 = arith.constant 32 : index
    %c0_19 = arith.constant 0 : index
    %14 = vector.load %arg7[%c32, %c0_19] : memref<33x32xf32, #tpu.memory_space<vmem>>, vector<1x32xf32>
    %15 = tpu.concatenate %0, %5, %7 in 1 : vector<8x96xf32>, vector<8x32xf32>, vector<8x32xf32> -> vector<8x160xf32>
    %cst = arith.constant dense<0.000000e+00> : vector<8x128xf32>
    %16 = tpu.matmul %15, %9, %cst {dimension_numbers = #tpu.dot_dimension_numbers<[1], [0], [0], [1], [0, 0, 1, 1], [], []>} : vector<8x160xf32>, vector<160x128xf32>, vector<8x128xf32> -> vector<8x128xf32>
    %17 = vector.broadcast %11 : vector<1x128xf32> to vector<8x128xf32>
    %18 = arith.addf %16, %17 : vector<8x128xf32>
    %19 = arith.negf %18 : vector<8x128xf32>
    %20 = math.exp %19 : vector<8x128xf32>
    %cst_20 = arith.constant 1.000000e+00 : f32
    %21 = vector.broadcast %cst_20 : f32 to vector<8x128xf32>
    %22 = arith.addf %21, %20 : vector<8x128xf32>
    %23 = arith.divf %21, %22 : vector<8x128xf32>
    %24 = math.tanh %18 : vector<8x128xf32>
    %25 = vector.extract_strided_slice %23 {offsets = [0, 0], sizes = [8, 32], strides = [1, 1]} : vector<8x128xf32> to vector<8x32xf32>
    %26 = vector.extract_strided_slice %23 {offsets = [0, 32], sizes = [8, 32], strides = [1, 1]} : vector<8x128xf32> to vector<8x32xf32>
    %27 = vector.extract_strided_slice %24 {offsets = [0, 64], sizes = [8, 32], strides = [1, 1]} : vector<8x128xf32> to vector<8x32xf32>
    %28 = vector.extract_strided_slice %23 {offsets = [0, 96], sizes = [8, 32], strides = [1, 1]} : vector<8x128xf32> to vector<8x32xf32>
    %29 = arith.mulf %26, %6 : vector<8x32xf32>
    %30 = arith.mulf %25, %27 : vector<8x32xf32>
    %31 = arith.addf %29, %30 : vector<8x32xf32>
    %32 = math.tanh %31 : vector<8x32xf32>
    %33 = arith.mulf %28, %32 : vector<8x32xf32>
    %cst_21 = arith.constant dense<0.000000e+00> : vector<8x32xf32>
    %34 = tpu.matmul %33, %13, %cst_21 {dimension_numbers = #tpu.dot_dimension_numbers<[1], [0], [0], [1], [0, 0, 1, 1], [], []>} : vector<8x32xf32>, vector<32x32xf32>, vector<8x32xf32> -> vector<8x32xf32>
    %35 = vector.shape_cast %34 : vector<8x32xf32> to vector<8x1x32xf32>
    %36 = vector.broadcast %35 : vector<8x1x32xf32> to vector<8x8x32xf32>
    %37 = arith.addf %3, %36 : vector<8x8x32xf32>
    %38 = math.tanh %37 : vector<8x8x32xf32>
    %39 = vector.shape_cast %14 : vector<1x32xf32> to vector<1x1x32xf32>
    %40 = vector.broadcast %39 : vector<1x1x32xf32> to vector<8x8x32xf32>
    %41 = arith.mulf %38, %40 : vector<8x8x32xf32>
    %cst_22 = arith.constant dense<0.000000e+00> : vector<8x8xf32>
    %42 = vector.multi_reduction <add>, %41, %cst_22 [2] : vector<8x8x32xf32> to vector<8x8xf32>
    %43 = arith.mulf %42, %4 : vector<8x8xf32>
    %cst_23 = arith.constant dense<0xFF800000> : vector<8xf32>
    %44 = vector.multi_reduction <maximumf>, %43, %cst_23 [1] : vector<8x8xf32> to vector<8xf32>
    %cst_24 = arith.constant 0xFF800000 : f32
    %45 = vector.broadcast %cst_24 : f32 to vector<8xf32>
    %46 = arith.maximumf %45, %44 : vector<8xf32>
    %47 = vector.shape_cast %46 : vector<8xf32> to vector<8x1xf32>
    %48 = vector.broadcast %47 : vector<8x1xf32> to vector<8x8xf32>
    %49 = arith.subf %43, %48 : vector<8x8xf32>
    %50 = math.exp %49 : vector<8x8xf32>
    %cst_25 = arith.constant dense<0.000000e+00> : vector<8xf32>
    %51 = vector.multi_reduction <add>, %50, %cst_25 [1] : vector<8x8xf32> to vector<8xf32>
    %52 = vector.shape_cast %51 : vector<8xf32> to vector<8x1xf32>
    %53 = vector.broadcast %52 : vector<8x1xf32> to vector<8x8xf32>
    %54 = arith.divf %50, %53 : vector<8x8xf32>
    %55 = arith.mulf %54, %4 : vector<8x8xf32>
    %cst_26 = arith.constant dense<0.000000e+00> : vector<8xf32>
    %56 = vector.multi_reduction <add>, %55, %cst_26 [1] : vector<8x8xf32> to vector<8xf32>
    %57 = vector.shape_cast %56 : vector<8xf32> to vector<8x1xf32>
    %cst_27 = arith.constant 9.99999982E-14 : f32
    %58 = vector.broadcast %cst_27 : f32 to vector<8x1xf32>
    %59 = arith.addf %57, %58 : vector<8x1xf32>
    %60 = vector.broadcast %59 : vector<8x1xf32> to vector<8x8xf32>
    %61 = arith.divf %55, %60 : vector<8x8xf32>
    %62 = vector.shape_cast %61 : vector<8x8xf32> to vector<8x8x1xf32>
    %63 = vector.broadcast %62 : vector<8x8x1xf32> to vector<8x8x64xf32>
    %64 = arith.mulf %63, %2 : vector<8x8x64xf32>
    %cst_28 = arith.constant dense<0.000000e+00> : vector<8x64xf32>
    %65 = vector.multi_reduction <add>, %64, %cst_28 [1] : vector<8x8x64xf32> to vector<8x64xf32>
    %66 = tpu.concatenate %65, %33, %7 in 1 : vector<8x64xf32>, vector<8x32xf32>, vector<8x32xf32> -> vector<8x128xf32>
    %cst_29 = arith.constant dense<0.000000e+00> : vector<8x128xf32>
    %67 = tpu.matmul %66, %10, %cst_29 {dimension_numbers = #tpu.dot_dimension_numbers<[1], [0], [0], [1], [0, 0, 1, 1], [], []>} : vector<8x128xf32>, vector<128x128xf32>, vector<8x128xf32> -> vector<8x128xf32>
    %68 = vector.broadcast %12 : vector<1x128xf32> to vector<8x128xf32>
    %69 = arith.addf %67, %68 : vector<8x128xf32>
    %70 = arith.negf %69 : vector<8x128xf32>
    %71 = math.exp %70 : vector<8x128xf32>
    %cst_30 = arith.constant 1.000000e+00 : f32
    %72 = vector.broadcast %cst_30 : f32 to vector<8x128xf32>
    %73 = arith.addf %72, %71 : vector<8x128xf32>
    %74 = arith.divf %72, %73 : vector<8x128xf32>
    %75 = math.tanh %69 : vector<8x128xf32>
    %76 = vector.extract_strided_slice %74 {offsets = [0, 0], sizes = [8, 32], strides = [1, 1]} : vector<8x128xf32> to vector<8x32xf32>
    %77 = vector.extract_strided_slice %74 {offsets = [0, 32], sizes = [8, 32], strides = [1, 1]} : vector<8x128xf32> to vector<8x32xf32>
    %78 = vector.extract_strided_slice %75 {offsets = [0, 64], sizes = [8, 32], strides = [1, 1]} : vector<8x128xf32> to vector<8x32xf32>
    %79 = vector.extract_strided_slice %74 {offsets = [0, 96], sizes = [8, 32], strides = [1, 1]} : vector<8x128xf32> to vector<8x32xf32>
    %80 = arith.mulf %77, %8 : vector<8x32xf32>
    %81 = arith.mulf %76, %78 : vector<8x32xf32>
    %82 = arith.addf %80, %81 : vector<8x32xf32>
    %83 = math.tanh %82 : vector<8x32xf32>
    %84 = arith.mulf %79, %83 : vector<8x32xf32>
    %85 = tpu.concatenate %33, %31, %84, %82 in 1 : vector<8x32xf32>, vector<8x32xf32>, vector<8x32xf32>, vector<8x32xf32> -> vector<8x128xf32>
    %c0_31 = arith.constant 0 : index
    %c0_32 = arith.constant 0 : index
    %86 = vector.load %arg8[%c0_31, %c0_32] : memref<8x128xf32, #tpu.memory_space<vmem>>, vector<8x128xf32>
    tpu.vector_store %arg8[%c0_31, %c0_32], %85 {strides = array<i32>} : memref<8x128xf32, #tpu.memory_space<vmem>>, vector<8x128xf32>,
    return
  }
}

</mosaic_0001>

<bundles_post_ra>
// kernel: tpu_custom_call.1
= control target key start
LH: loop header
LB: loop body
LE: loop exit
PB: predicated region body
PF: predicated region fallthrough
CT: control target
= control target key end

     0   :  { %13 = vsyncpa [#allocation3], 0  ;;  %s2033_s0 = inlined_call_operand.vmem [shape: f32[8,96], index: 0, kind: input, shape index: {}]   ;;  %s2034_s1 = inlined_call_operand.hbm [shape: f32[8,128], index: 1, kind: input, shape index: {}, may-alias: {1,8}]   ;;  %s2035_s2 = inlined_call_operand.vmem [shape: f32[8,8,64], index: 2, kind: input, shape index: {}]   ;;  %s2036_s3 = inlined_call_operand.hbm [shape: f32[8,8,32], index: 3, kind: input, shape index: {}]   ;;  %s2037_s4 = inlined_call_operand.vmem [shape: f32[8,8], index: 4, kind: input, shape index: {}]   ;;  %s2038_s5 = inlined_call_operand.hbm [shape: f32[288,128], index: 5, kind: input, shape index: {}]   ;;  %s2039_s6 = inlined_call_operand.vmem [shape: f32[2,128], index: 6, kind: input, shape index: {}]   ;;  %s2040_s7 = inlined_call_operand.vmem [shape: f32[33,32], index: 7, kind: input, shape index: {}]   ;;  %s2041_s8 = inlined_call_operand.hbm [shape: f32[8,128], index: 8, kind: output, shape index: {}, may-alias: {1,8}]  }
   0x1   :  { %14 = vsyncpa [#allocation6], 0 }
   0x2   :  { %15 = vsyncpa [#allocation4], 0  ;;  %s1535_s27 = smov [#allocation5]   ;;  %s1441_s9 = scalar_lea.hbm %s2036_s3, 1024 }
   0x3   :  { %s35_s28 = sshll.u32 %s1535_s27, 4  ;;  %p1442_p0 = scmp.ne.s32.totalorder %s2036_s3, %s1441_s9  ;;  %s36_s28 = int_to_ptr.vmem [resolvable:$true] %s35_s28 }
   0x4   :  { %p1445_p1 = scmp.lt.u32.totalorder %s1441_s9, %s2036_s3 }
   0x6   :  { %p1447_p2 = pnand %p1445_p1, %p1442_p0 }
   0x8   :  { %1450 = shalt.err (!%p1447_p2)
}
   0x9   :  { %s1451_s14 = scalar_lea.vmem %s36_s28, 1024  ;;  %p1456_p4 = scmp.lt.s32.totalorder %s36_s28, %s36_s28 }
   0xa   :  { %p1452_p3 = scmp.ne.s32.totalorder %s36_s28, %s1451_s14  ;;  %p1457_p5 = scmp.lt.s32.totalorder %s1451_s14, %s1451_s14 }
   0xc   :  { %p1458_p6 = por %p1457_p5, %p1456_p4 }
   0xe   :  { %p1459_p7 = pnand %p1458_p6, %p1452_p3 }
  0x10   :  { %1462 = shalt.err (!%p1459_p7)
}
  0x11   :  { %s1536_s15 = smov 128   ;;  %s1537_s16 = smov 8  }
  0x12   :  { %41 = dma.hbm_to_vmem [thread:$0]  %s2036_s3, 1024, %s36_s28, [#allocation6], %s1536_s15, %s1536_s15, %s1537_s16  }
  0x13   :  { %s1538_s19 = smov [#allocation2]   ;;  %s1539_s21 = smov [#allocation7]  }
  0x14   :  { %s24_s20 = sshll.u32 %s1538_s19, 4  ;;  %s49_s22 = sshll.u32 %s1539_s21, 4  ;;  %s25_s20 = int_to_ptr.vmem [resolvable:$true] %s24_s20  ;;  %s50_s22 = int_to_ptr.vmem [resolvable:$true] %s49_s22 }
  0x15   :  { %s1463_s25 = scalar_lea.hbm %s2034_s1, 128 }
  0x16   :  { %p1464_p8 = scmp.ne.s32.totalorder %s2034_s1, %s1463_s25  ;;  %p1467_p9 = scmp.lt.u32.totalorder %s1463_s25, %s2034_s1 }
  0x18   :  { %p1469_p10 = pnand %p1467_p9, %p1464_p8 }
  0x1a   :  { %1472 = shalt.err (!%p1469_p10)
}
  0x1b   :  { %s1473_s3 = scalar_lea.vmem %s25_s20, 128  ;;  %p1478_p12 = scmp.lt.s32.totalorder %s25_s20, %s25_s20 }
  0x1c   :  { %p1474_p11 = scmp.ne.s32.totalorder %s25_s20, %s1473_s3  ;;  %p1479_p13 = scmp.lt.s32.totalorder %s1473_s3, %s1473_s3 }
  0x1e   :  { %p1480_p0 = por %p1479_p13, %p1478_p12 }
  0x20   :  { %p1481_p1 = pnand %p1480_p0, %p1474_p11 }
  0x22   :  { %1484 = shalt.err (!%p1481_p1)
}
  0x23   :  { %27 = dma.hbm_to_vmem [thread:$0]  %s2034_s1, 128, %s25_s20, [#allocation3]  }
  0x24   :  { %s1485_s12 = scalar_lea.hbm %s2038_s5, 4608 }
  0x25   :  { %p1486_p2 = scmp.ne.s32.totalorder %s2038_s5, %s1485_s12  ;;  %p1489_p3 = scmp.lt.u32.totalorder %s1485_s12, %s2038_s5 }
  0x27   :  { %p1491_p4 = pnand %p1489_p3, %p1486_p2 }
  0x29   :  { %1494 = shalt.err (!%p1491_p4)
}
  0x2a   :  { %s1495_s19 = scalar_lea.vmem %s50_s22, 4608  ;;  %p1500_p6 = scmp.lt.s32.totalorder %s50_s22, %s50_s22 }
  0x2b   :  { %p1496_p5 = scmp.ne.s32.totalorder %s50_s22, %s1495_s19  ;;  %p1501_p7 = scmp.lt.s32.totalorder %s1495_s19, %s1495_s19 }
  0x2d   :  { %p1502_p8 = por %p1501_p7, %p1500_p6 }
  0x2f   :  { %p1503_p9 = pnand %p1502_p8, %p1496_p5 }
  0x31   :  { %1506 = shalt.err (!%p1503_p9)
}
  0x32   :  { %55 = dma.hbm_to_vmem [thread:$0]  %s2038_s5, 4608, %s50_s22, [#allocation6], %s1536_s15, %s1536_s15, %s1537_s16  }
  0x33   :  { %1529 = dma.done.wait [#allocation3], 128  }
  0x34   :  { %1530 = vsyncadd [#allocation3], 4294967168 }
  0x35   :  { %1531 = dma.done.wait [#allocation6], 5632  }
  0x36   :  { %1532 = vsyncadd [#allocation6], 4294961664  ;;  %v1540_v0 = vmov 0.0|0.0   ;;  %v1638_v1 = vld [vmem:[#allocation2] sm:$0xff]  ;;  %v88_v2 = vld [vmem:[#allocation7] sm:$0xff]  ;;  %s1541_s21 = smov 96   ;;  %v320_v58 = vlaneseq }
  0x37   :  { %1285 = vmatprep.subr.bf16.mxu0 %v1540_v0  ;;  %1315 = vmatprep.subr.bf16.mxu1 %v1540_v0  ;;  %v89_v3 = vld [vmem:[#allocation7 + $0x8] sm:$0xff]  ;;  %v90_v5 = vld [vmem:[#allocation7 + $0x10] sm:$0xff]  ;;  %v91_v6 = vld [vmem:[#allocation7 + $0x18] sm:$0xff]  ;;  %s1542_s5 = smov 64   ;;  %vm143_vm0 = vcmask 261120   ;;  %vm137_vm1 = vcmask 785408  }
  0x38   :  { %132 = vrot.lane.b32.xlu0 %v1638_v1, %s1541_s21  ;;  %v1286_v4 = vpack.c.bf16 %v89_v3, %v88_v2  ;;  %v1289_v7 = vpack.c.bf16 %v91_v6, %v90_v5  ;;  %v92_v8 = vld [vmem:[#allocation7 + $0x20] sm:$0xff]  ;;  %v93_v9 = vld [vmem:[#allocation7 + $0x28] sm:$0xff]  ;;  %v94_v11 = vld [vmem:[#allocation7 + $0x30] sm:$0xff]  ;;  %vm1544_vm2 = vmmov 0   ;;  %v1545_v55 = vmov 0.0  }
  0x39   :  { %v1292_v10 = vpack.c.bf16 %v93_v9, %v92_v8  ;;  %v95_v12 = vld [vmem:[#allocation7 + $0x38] sm:$0xff]  ;;  %v96_v14 = vld [vmem:[#allocation7 + $0x40] sm:$0xff]  ;;  %v97_v15 = vld [vmem:[#allocation7 + $0x48] sm:$0xff]  ;;  %1247 = vmatprep.mubr.msk.f32.mxu1 %vm1544_vm2, %v1545_v55  ;;  %v1687_v59 = vshrl.u32 %v320_v58, 7  ;;  %vm596_vm3 = vcmask 1041409   ;;  %vm598_vm4 = vcmask 1042434  }
  0x3a   :  { %1287 = vmatpush1.bf16.msra.mxu0 %v1286_v4  ;;  %v1295_v13 = vpack.c.bf16 %v95_v12, %v94_v11  ;;  %v1298_v16 = vpack.c.bf16 %v97_v15, %v96_v14  ;;  %v98_v17 = vld [vmem:[#allocation7 + $0x50] sm:$0xff]  ;;  %v99_v18 = vld [vmem:[#allocation7 + $0x58] sm:$0xff]  ;;  %v100_v20 = vld [vmem:[#allocation7 + $0x60] sm:$0xff]  ;;  %v1546_v14 = vmov 1966171168   ;;  %vm600_vm5 = vcmask 1043459  }
  0x3b   :  { %1288 = vmatprep.subr.bf16.mxu0 %v1540_v0  ;;  %v1301_v19 = vpack.c.bf16 %v99_v18, %v98_v17  ;;  %v101_v21 = vld [vmem:[#allocation7 + $0x68] sm:$0xff]  ;;  %v102_v23 = vld [vmem:[#allocation7 + $0x70] sm:$0xff]  ;;  %v103_v24 = vld [vmem:[#allocation7 + $0x78] sm:$0xff]  ;;  %v1690_v60 = vsub.s32 1, %v1687_v59  ;;  %v1693_v61 = vsub.s32 4, %v1687_v59  ;;  %v1703_v2 = vsub.s32 0, %v1687_v59 }
  0x3c   :  { %135 = vrot.lane.b32.xlu0 %v1638_v1, %s1542_s5  ;;  %v1304_v22 = vpack.c.bf16 %v101_v21, %v100_v20  ;;  %v1307_v25 = vpack.c.bf16 %v103_v24, %v102_v23  ;;  %v104_v26 = vld [vmem:[#allocation7 + $0x80] sm:$0xff]  ;;  %v105_v27 = vld [vmem:[#allocation7 + $0x88] sm:$0xff]  ;;  %v106_v29 = vld [vmem:[#allocation7 + $0x90] sm:$0xff]  ;;  %v1719_v9 = vsub.s32 3, %v1687_v59  ;;  %v1724_v11 = vsub.s32 5, %v1687_v59 }
  0x3d   :  { %v1310_v28 = vpack.c.bf16 %v105_v27, %v104_v26  ;;  %v107_v30 = vld [vmem:[#allocation7 + $0x98] sm:$0xff]  ;;  %v127_v51 = vld [vmem:[%s2040_s7 + $0x8] sm:$0xff]  ;;  %v128_v52 = vld [vmem:[%s2040_s7 + $0x10] sm:$0xff]  ;;  %v318_v15 = vunpack.c.l.s4 %v1546_v14  ;;  %vm602_vm6 = vcmask 1044484   ;;  %vm604_vm7 = vcmask 1045509  }
  0x3e   :  { %1290 = vmatpush1.bf16.msra.mxu0 %v1289_v7  ;;  %v1313_v31 = vpack.c.bf16 %v107_v30, %v106_v29  ;;  %v69_v33 = vld [vmem:[%s2033_s0] sm:$0xff]  ;;  %s1543_s0 = smov 32   ;;  %v129_v54 = vld [vmem:[%s2040_s7 + $0x18] sm:$0xff]  ;;  %v1714_v7 = vsub.s32 2, %v1687_v59  ;;  %vm606_vm8 = vcmask 1046534   ;;  %vm608_vm9 = vcmask 1047559  }
  0x3f   :  { %1291 = vmatprep.subr.bf16.mxu0 %v1540_v0  ;;  %v1210_v36 = vld [vmem:[%s2039_s6] ss:$0 sm:$0xff]  ;;  %v1319_v56 = vpack.c.bf16 %v129_v54, %v128_v52  ;;  %vm611_vm10 = vcmask 64512   ;;  %vm1001_vm11 = vcmask 523264  }
  0x40   :  { %v126_v50 = vld [vmem:[%s2040_s7] sm:$0xff] }
  0x41   :  { %v1316_v53 = vpack.c.bf16 %v127_v51, %v126_v50  ;;  %v1698_v62 = vld [vmem:[%s2037_s4] sm:$0xff]  ;;  %v84_v51 = vld [vmem:[#allocation5 + $0x28] sm:$0xff] }
  0x42   :  { %1293 = vmatpush1.bf16.msra.mxu0 %v1292_v10  ;;  %v468_v63 = vrot.slane %v1698_v62, %v1690_v60  ;;  %v489_v3 = vrot.slane %v1698_v62, %v1693_v61  ;;  %v461_v6 = vrot.slane %v1698_v62, %v1703_v2  ;;  %v475_v8 = vrot.slane %v1698_v62, %v1714_v7 }
  0x43   :  { %1294 = vmatprep.subr.bf16.mxu0 %v1540_v0  ;;  %1317 = vmatpush3.bf16.msra.mxu1 %v1316_v53  ;;  %v482_v10 = vrot.slane %v1698_v62, %v1719_v9  ;;  %v496_v12 = vrot.slane %v1698_v62, %v1724_v11 }
  0x44   :  { %1318 = vmatprep.subr.bf16.mxu1 %v1540_v0 }
  0x46   :  { %1296 = vmatpush1.bf16.msra.mxu0 %v1295_v13 }
  0x47   :  { %1297 = vmatprep.subr.bf16.mxu0 %v1540_v0  ;;  %1320 = vmatpush3.bf16.msra.mxu1 %v1319_v56 }
  0x48   :  { %1321 = vmatprep.subr.bf16.mxu1 %v1540_v0 }
  0x4a   :  { %1299 = vmatpush1.bf16.msra.mxu0 %v1298_v16  ;;  %v319_v16 = vunpack.c.0.s8 %v318_v15 }
  0x4b   :  { %1300 = vmatprep.subr.bf16.mxu0 %v1540_v0 }
  0x4c   :  { %v322_v17 = vsub.s32 %v319_v16, %v1687_v59 }
  0x4e   :  { %1302 = vmatpush1.bf16.msra.mxu0 %v1301_v19 }
  0x4f   :  { %1303 = vmatprep.subr.bf16.mxu0 %v1540_v0 }
  0x52   :  { %1305 = vmatpush1.bf16.msra.mxu0 %v1304_v22 }
  0x53   :  { %1306 = vmatprep.subr.bf16.mxu0 %v1540_v0 }
  0x56   :  { %1308 = vmatpush1.bf16.msra.mxu0 %v1307_v25  ;;  %v79_v25 = vld [vmem:[#allocation5] sm:$0xff] }
  0x57   :  { %1309 = vmatprep.subr.bf16.mxu0 %v1540_v0 }
  0x5a   :  { %1311 = vmatpush1.bf16.msra.mxu0 %v1310_v28 }
  0x5b   :  { %1312 = vmatprep.subr.bf16.mxu0 %v1540_v0 }
  0x5e   :  { %1314 = vmatpush1.bf16.msra.mxu0 %v1313_v31  ;;  %v80_v31 = vld [vmem:[#allocation5 + $0x8] sm:$0xff] }
  0xaa   :  { %v133_v32 = vpop.permute.xlu0 %132 }
  0xab   :  { %v138_v35 = vsel %vm137_vm1, %v69_v33, %v133_v32  ;;  %v81_v32 = vld [vmem:[#allocation5 + $0x10] sm:$0xff] }
  0xae   :  { %v1656_v34 = vpop.permute.xlu0 %135 }
  0xaf   :  { %1211 = vmatprep.mubr.msk.f32.mxu0 %vm143_vm0, %v1656_v34 }
  0xb0   :  { %211 = vmatmul.mubr.f32.vlgmr.msra.gmra.mrb[0].mxu0 %v138_v35 }
 0x183   :  { %v212_v37 = vpop.f32.mrb[0].mxu0 }
 0x184   :  { %v213_v38 = vadd.f32 %v1210_v36, %v212_v37  ;;  %v214_v39 = vpop.f32.mrb[1].mxu0 }
 0x185   :  { %v83_v39 = vld [vmem:[#allocation5 + $0x20] sm:$0xff] }
 0x186   :  { %1361 = vtanh.f32 %v213_v38  ;;  %v1212_v41 = vmul.f32 -1.442695, %v213_v38  ;;  %v82_v38 = vld [vmem:[#allocation5 + $0x18] sm:$0xff] }
 0x188   :  { %1363 = vpow2.f32 %v1212_v41 }
 0x190   :  { %v1362_v40 = vpop.eup %1361 }
 0x191   :  { %225 = vrot.lane.b32.xlu1 %v1362_v40, %s1542_s5 }
 0x192   :  { %v1364_v42 = vpop.eup %1363 }
 0x193   :  { %v219_v43 = vadd.f32 1.0, %v1364_v42 }
 0x195   :  { %1365 = vrcp.f32 %v219_v43 }
 0x19f   :  { %v1366_v44 = vpop.eup %1365 }
 0x1a0   :  { %v223_v47 = vmul.f32 %v1366_v44, %v1638_v1 }
 0x203   :  { %v226_v45 = vpop.permute.xlu1 %225 }
 0x204   :  { %v228_v46 = vmul.f32 %v1366_v44, %v226_v45 }
 0x206   :  { %230 = vrot.lane.b32.xlu1 %v228_v46, %s1543_s0  ;;  %v85_v46 = vld [vmem:[#allocation5 + $0x30] sm:$0xff] }
 0x278   :  { %v231_v48 = vpop.permute.xlu1 %230 }
 0x279   :  { %v1667_v49 = vadd.f32 %v231_v48, %v223_v47 }
 0x27b   :  { %1367 = vtanh.f32 %v1667_v49 }
 0x285   :  { %v1368_v57 = vpop.eup %1367 }
 0x286   :  { %236 = vrot.lane.b32.xlu0 %v1368_v57, %s1542_s5  ;;  %v86_v57 = vld [vmem:[#allocation5 + $0x38] sm:$0xff] }
 0x28a   :  { %470 = vbcast.lane.b32.xlu0 %v468_v63, 256 }
 0x28e   :  { %491 = vbcast.lane.b32.xlu0 %v489_v3, 256  ;;  %v1214_v3 = vld [vmem:[%s2040_s7 + $0x20] ss:$0 sm:$0xff] }
 0x2f8   :  { %v237_v4 = vpop.permute.xlu0 %236 }
 0x2f9   :  { %v1707_v5 = vmul.f32 %v1366_v44, %v237_v4 }
 0x2fb   :  { %241 = vrot.lane.b32.xlu1 %v1707_v5, %s1543_s0 }
 0x2ff   :  { %463 = vbcast.lane.b32.xlu1 %v461_v6, 256 }
 0x303   :  { %477 = vbcast.lane.b32.xlu1 %v475_v8, 256 }
 0x307   :  { %484 = vbcast.lane.b32.xlu1 %v482_v10, 256 }
 0x30b   :  { %498 = vbcast.lane.b32.xlu1 %v496_v12, 256 }
 0x36d   :  { %v1728_v13 = vpop.permute.xlu1 %241 }
 0x36e   :  { %1248 = vmatmul.mubr.msk.f32.vlgmr.msra.gmra.mrb[0].mxu1 %vm143_vm0, %v1728_v13 }
 0x36f   :  { %1282 = vmatprep.mubr.msk.f32.mxu1 %vm1544_vm2, %v1545_v55 }
 0x441   :  { %v311_v18 = vpop.f32.mrb[0].mxu1 }
 0x442   :  { %v316_v19 = vcombine.high %v311_v18, %v311_v18  ;;  %v323_v20 = vrot.slane %v311_v18, %v322_v17  ;;  %v1249_v21 = vpop.f32.mrb[1].mxu1 }
 0x444   :  { %v330_v22 = vrot.slane %v316_v19, %v322_v17  ;;  %v331_v23 = vcombine.high %v323_v20, %v323_v20  ;;  %v339_v24 = vrot.slane %v323_v20, %v322_v17 }
 0x446   :  { %v332_v26 = vcombine.high %v330_v22, %v330_v22  ;;  %v346_v27 = vrot.slane %v330_v22, %v322_v17  ;;  %v353_v28 = vrot.slane %v331_v23, %v322_v17  ;;  %v361_v29 = vcombine.high %v339_v24, %v339_v24 }
 0x447   :  { %v368_v30 = vrot.slane %v339_v24, %v1703_v2 }
 0x448   :  { %v360_v33 = vrot.slane %v332_v26, %v322_v17  ;;  %v362_v35 = vcombine.high %v346_v27, %v346_v27  ;;  %v363_v36 = vcombine.high %v353_v28, %v353_v28  ;;  %v372_v37 = vrot.slane %v353_v28, %v1703_v2 }
 0x449   :  { %v376_v40 = vrot.slane %v361_v29, %v1703_v2  ;;  %v384_v41 = vrot.slane %v346_v27, %v1703_v2  ;;  %v405_v42 = vadd.f32 %v368_v30, %v79_v25 }
 0x44a   :  { %v364_v43 = vcombine.high %v360_v33, %v360_v33  ;;  %v380_v44 = vrot.slane %v363_v36, %v1703_v2  ;;  %v392_v45 = vrot.slane %v362_v35, %v1703_v2  ;;  %v388_v47 = vrot.slane %v360_v33, %v1703_v2 }
 0x44b   :  { %v406_v48 = vadd.f32 %v372_v37, %v80_v31  ;;  %v407_v50 = vadd.f32 %v376_v40, %v81_v32  ;;  %1369 = vtanh.f32 %v405_v42  ;;  %v409_v53 = vadd.f32 %v384_v41, %v83_v39  ;;  %v1763_v39 = vpop.permute.xlu1 %463  ;;  %v1767_v41 = vpop.permute.xlu0 %470 }
 0x44c   :  { %v408_v52 = vadd.f32 %v380_v44, %v82_v38  ;;  %v411_v54 = vadd.f32 %v392_v45, %v85_v46  ;;  %v396_v55 = vrot.slane %v364_v43, %v1703_v2  ;;  %v410_v56 = vadd.f32 %v388_v47, %v84_v51 }
 0x44d   :  { %1371 = vtanh.f32 %v406_v48  ;;  %v1547_v33 = vmov 0   ;;  %v1754_v35 = vsub.s32 7, %v1687_v59  ;;  %v1759_v37 = vsub.s32 6, %v1687_v59 }
 0x44e   :  { %1373 = vtanh.f32 %v407_v50  ;;  %v412_v63 = vadd.f32 %v396_v55, %v86_v57  ;;  %1359 = vset.pattern.permute.xlu0 %v1547_v33  ;;  %1360 = vset.pattern.permute.xlu1 %v1547_v33 }
 0x44f   :  { %1375 = vtanh.f32 %v408_v52  ;;  %v510_v36 = vrot.slane %v1698_v62, %v1754_v35  ;;  %v503_v38 = vrot.slane %v1698_v62, %v1759_v37  ;;  %v1765_v40 = vpop.permute.xlu1 %477  ;;  %v1771_v43 = vpop.permute.xlu0 %491 }
 0x450   :  { %1377 = vtanh.f32 %v409_v53 }
 0x451   :  { %1379 = vtanh.f32 %v411_v54 }
 0x452   :  { %1381 = vtanh.f32 %v410_v56 }
 0x453   :  { %1383 = vtanh.f32 %v412_v63  ;;  %v1769_v42 = vpop.permute.xlu1 %484 }
 0x455   :  { %v1370_v4 = vpop.eup %1369 }
 0x456   :  { %v425_v6 = vmul.f32 %v1370_v4, %v1214_v3 }
 0x457   :  { %v1372_v8 = vpop.eup %1371  ;;  %v1773_v44 = vpop.permute.xlu1 %498 }
 0x458   :  { %v1374_v10 = vpop.eup %1373  ;;  %v433_v12 = vsel %vm143_vm0, %v425_v6, 0.0  ;;  %v426_v14 = vmul.f32 %v1372_v8, %v1214_v3 }
 0x459   :  { %v1376_v15 = vpop.eup %1375  ;;  %434 = vadd.xlane.f32.xlu0 %v433_v12  ;;  %v427_v16 = vmul.f32 %v1374_v10, %v1214_v3  ;;  %v563_v10 = vand.u32 127, %v320_v58 }
 0x45a   :  { %v1378_v17 = vpop.eup %1377  ;;  %v436_v18 = vsel %vm143_vm0, %v426_v14, 0.0  ;;  %v428_v22 = vmul.f32 %v1376_v15, %v1214_v3 }
 0x45b   :  { %437 = vadd.xlane.f32.xlu1 %v436_v18  ;;  %v429_v19 = vmul.f32 %v1378_v17, %v1214_v3  ;;  %v1380_v20 = vpop.eup %1379  ;;  %v439_v21 = vsel %vm143_vm0, %v427_v16, 0.0  ;;  %v1810_v15 = vsub.s32 %v563_v10, %v1687_v59 }
 0x45c   :  { %v1382_v23 = vpop.eup %1381  ;;  %v431_v25 = vmul.f32 %v1380_v20, %v1214_v3  ;;  %v442_v26 = vsel %vm143_vm0, %v428_v22, 0.0 }
 0x45d   :  { %440 = vadd.xlane.f32.xlu0 %v439_v21  ;;  %v445_v24 = vsel %vm143_vm0, %v429_v19, 0.0  ;;  %v430_v27 = vmul.f32 %v1382_v23, %v1214_v3  ;;  %v1384_v28 = vpop.eup %1383 }
 0x45e   :  { %v451_v29 = vsel %vm143_vm0, %v431_v25, 0.0  ;;  %v432_v31 = vmul.f32 %v1384_v28, %v1214_v3 }
 0x45f   :  { %446 = vadd.xlane.f32.xlu1 %v445_v24  ;;  %v448_v30 = vsel %vm143_vm0, %v430_v27, 0.0 }
 0x460   :  { %v454_v32 = vsel %vm143_vm0, %v432_v31, 0.0 }
 0x461   :  { %443 = vadd.xlane.f32.xlu0 %v442_v26 }
 0x463   :  { %452 = vadd.xlane.f32.xlu1 %v451_v29 }
 0x465   :  { %449 = vadd.xlane.f32.xlu0 %v448_v30 }
 0x469   :  { %455 = vadd.xlane.f32.xlu0 %v454_v32 }
 0x474   :  { %512 = vbcast.lane.b32.xlu1 %v510_v36, 256 }
 0x47f   :  { %505 = vbcast.lane.b32.xlu0 %v503_v38, 256 }
 0x4e6   :  { %v435_v45 = vpop.xlane.xlu0 %434 }
 0x4e7   :  { %v1776_v46 = vmul.f32 %v1763_v39, %v435_v45 }
 0x4e8   :  { %v438_v47 = vpop.xlane.xlu1 %437 }
 0x4e9   :  { %v1779_v62 = vmul.f32 %v1767_v41, %v438_v47  ;;  %539 = vperm.xlu0 %1359, %v1776_v46  }
 0x4ea   :  { %v441_v48 = vpop.xlane.xlu0 %440 }
 0x4eb   :  { %542 = vperm.xlu1 %1360, %v1779_v62   ;;  %v524_v51 = vmul.f32 %v1765_v40, %v441_v48 }
 0x4ec   :  { %v447_v50 = vpop.xlane.xlu1 %446 }
 0x4ed   :  { %v1788_v55 = vmul.f32 %v1771_v43, %v447_v50 }
 0x4ee   :  { %v444_v52 = vpop.xlane.xlu0 %443 }
 0x4ef   :  { %v1785_v53 = vmul.f32 %v1769_v42, %v444_v52  ;;  %545 = vperm.xlu1 %1360, %v524_v51  }
 0x4f0   :  { %v453_v54 = vpop.xlane.xlu1 %452 }
 0x4f1   :  { %548 = vperm.xlu0 %1359, %v1785_v53  }
 0x4f2   :  { %v450_v56 = vpop.xlane.xlu0 %449 }
 0x4f3   :  { %v1792_v57 = vmul.f32 %v1773_v44, %v450_v56  ;;  %551 = vperm.xlu1 %1360, %v1788_v55  }
 0x4f4   :  { %v1795_v63 = vpop.permute.xlu1 %512 }
 0x4f5   :  { %554 = vperm.xlu0 %1359, %v1792_v57  }
 0x4f6   :  { %v456_v3 = vpop.xlane.xlu0 %455 }
 0x4f7   :  { %v1799_v4 = vmul.f32 %v1795_v63, %v456_v3 }
 0x4f9   :  { %560 = vperm.xlu0 %1359, %v1799_v4  }
 0x4fa   :  { %v1802_v6 = vpop.permute.xlu0 %505 }
 0x4fb   :  { %v1805_v8 = vmul.f32 %v1802_v6, %v453_v54 }
 0x4fd   :  { %557 = vperm.xlu1 %1360, %v1805_v8  }
 0x568   :  { %v540_v14 = vpop.permute.xlu0 %539 }
 0x569   :  { %v567_v20 = vrot.slane %v540_v14, %v1810_v15 }
 0x56a   :  { %v543_v12 = vpop.permute.xlu1 %542 }
 0x56b   :  { %v571_v17 = vrot.slane %v543_v12, %v1810_v15 }
 0x56d   :  { %v597_v21 = vsel %vm596_vm3, %v571_v17, %v567_v20 }
 0x56e   :  { %v546_v16 = vpop.permute.xlu1 %545 }
 0x56f   :  { %v575_v19 = vrot.slane %v546_v16, %v1810_v15 }
 0x570   :  { %v549_v18 = vpop.permute.xlu0 %548 }
 0x571   :  { %v579_v22 = vrot.slane %v549_v18, %v1810_v15  ;;  %v599_v23 = vsel %vm598_vm4, %v575_v19, %v597_v21 }
 0x572   :  { %v552_v58 = vpop.permute.xlu1 %551 }
 0x573   :  { %v583_v24 = vrot.slane %v552_v58, %v1810_v15  ;;  %v601_v25 = vsel %vm600_vm5, %v579_v22, %v599_v23 }
 0x574   :  { %v555_v59 = vpop.permute.xlu0 %554 }
 0x575   :  { %v587_v26 = vrot.slane %v555_v59, %v1810_v15  ;;  %v603_v27 = vsel %vm602_vm6, %v583_v24, %v601_v25 }
 0x577   :  { %v605_v31 = vsel %vm604_vm7, %v587_v26, %v603_v27 }
 0x578   :  { %v561_v28 = vpop.permute.xlu0 %560 }
 0x579   :  { %v595_v32 = vrot.slane %v561_v28, %v1810_v15 }
 0x57c   :  { %v558_v29 = vpop.permute.xlu1 %557 }
 0x57d   :  { %v591_v30 = vrot.slane %v558_v29, %v1810_v15 }
 0x57f   :  { %v607_v33 = vsel %vm606_vm8, %v591_v30, %v605_v31 }
 0x580   :  { %v609_v36 = vsel %vm608_vm9, %v595_v32, %v607_v33 }
 0x581   :  { %v612_v38 = vsel %vm611_vm10, %v609_v36, -inf }
 0x582   :  { %613 = vmax.xlane.f32.xlu1 %v612_v38 }
 0x60f   :  { %v614_v45 = vpop.xlane.xlu1 %613 }
 0x610   :  { %v619_v47 = vrot.slane %v614_v45, %v1703_v2  ;;  %v623_v48 = vrot.slane %v614_v45, %v1690_v60  ;;  %v627_v50 = vrot.slane %v614_v45, %v1714_v7  ;;  %v631_v3 = vrot.slane %v614_v45, %v1719_v9 }
 0x611   :  { %v635_v14 = vrot.slane %v614_v45, %v1693_v61  ;;  %v639_v18 = vrot.slane %v614_v45, %v1724_v11 }
 0x612   :  { %v656_v52 = vsub.f32 %v1776_v46, %v619_v47  ;;  %v657_v54 = vsub.f32 %v1779_v62, %v623_v48  ;;  %v658_v10 = vsub.f32 %v524_v51, %v627_v50  ;;  %v659_v16 = vsub.f32 %v1785_v53, %v631_v3 }
 0x613   :  { %v660_v19 = vsub.f32 %v1788_v55, %v635_v14  ;;  %v643_v62 = vrot.slane %v614_v45, %v1759_v37  ;;  %v661_v51 = vsub.f32 %v1792_v57, %v639_v18  ;;  %v647_v53 = vrot.slane %v614_v45, %v1754_v35 }
 0x614   :  { %v664_v56 = vmul.f32 1.442695, %v656_v52  ;;  %v666_v12 = vmul.f32 1.442695, %v657_v54  ;;  %v668_v17 = vmul.f32 1.442695, %v658_v10 }
 0x615   :  { %v670_v46 = vmul.f32 1.442695, %v659_v16  ;;  %v672_v21 = vmul.f32 1.442695, %v660_v19  ;;  %v662_v55 = vsub.f32 %v1805_v8, %v643_v62  ;;  %v674_v58 = vmul.f32 1.442695, %v661_v51 }
 0x616   :  { %1385 = vpow2.f32 %v664_v56  ;;  %v663_v59 = vsub.f32 %v1799_v4, %v647_v53 }
 0x617   :  { %1387 = vpow2.f32 %v666_v12  ;;  %v676_v57 = vmul.f32 1.442695, %v662_v55 }
 0x618   :  { %1389 = vpow2.f32 %v668_v17  ;;  %v678_v25 = vmul.f32 1.442695, %v663_v59 }
 0x619   :  { %1391 = vpow2.f32 %v670_v46 }
 0x61a   :  { %1393 = vpow2.f32 %v672_v21 }
 0x61b   :  { %1395 = vpow2.f32 %v674_v58 }
 0x61c   :  { %1397 = vpow2.f32 %v676_v57 }
 0x61d   :  { %1399 = vpow2.f32 %v678_v25 }
 0x620   :  { %v1838_v20 = vpop.eup %1385 }
 0x621   :  { %689 = vperm.xlu0 %1359, %v1838_v20   ;;  %v1843_v22 = vpop.eup %1387 }
 0x622   :  { %v1848_v23 = vpop.eup %1389 }
 0x623   :  { %v1852_v24 = vpop.eup %1391 }
 0x624   :  { %v1855_v26 = vpop.eup %1393 }
 0x625   :  { %692 = vperm.xlu0 %1359, %v1843_v22   ;;  %v1396_v8 = vpop.eup %1395 }
 0x626   :  { %v1858_v27 = vpop.eup %1397 }
 0x627   :  { %v1861_v4 = vpop.eup %1399 }
 0x629   :  { %695 = vperm.xlu0 %1359, %v1848_v23  }
 0x62d   :  { %698 = vperm.xlu0 %1359, %v1852_v24  }
 0x631   :  { %701 = vperm.xlu0 %1359, %v1855_v26  }
 0x635   :  { %704 = vperm.xlu0 %1359, %v1396_v8  }
 0x639   :  { %707 = vperm.xlu0 %1359, %v1858_v27  }
 0x63d   :  { %710 = vperm.xlu0 %1359, %v1861_v4  }
 0x6a0   :  { %v690_v28 = vpop.permute.xlu0 %689 }
 0x6a1   :  { %v715_v45 = vrot.slane %v690_v28, %v1810_v15 }
 0x6a4   :  { %v693_v29 = vpop.permute.xlu0 %692 }
 0x6a5   :  { %v719_v36 = vrot.slane %v693_v29, %v1810_v15 }
 0x6a7   :  { %v744_v52 = vsel %vm596_vm3, %v719_v36, %v715_v45 }
 0x6a8   :  { %v696_v30 = vpop.permute.xlu0 %695 }
 0x6a9   :  { %v723_v38 = vrot.slane %v696_v30, %v1810_v15 }
 0x6ab   :  { %v745_v56 = vsel %vm598_vm4, %v723_v38, %v744_v52 }
 0x6ac   :  { %v699_v31 = vpop.permute.xlu0 %698 }
 0x6ad   :  { %v727_v47 = vrot.slane %v699_v31, %v1810_v15 }
 0x6af   :  { %v746_v10 = vsel %vm600_vm5, %v727_v47, %v745_v56 }
 0x6b0   :  { %v702_v32 = vpop.permute.xlu0 %701 }
 0x6b1   :  { %v731_v48 = vrot.slane %v702_v32, %v1810_v15 }
 0x6b3   :  { %v747_v12 = vsel %vm602_vm6, %v731_v48, %v746_v10 }
 0x6b4   :  { %v705_v33 = vpop.permute.xlu0 %704 }
 0x6b5   :  { %v735_v54 = vrot.slane %v705_v33, %v1810_v15 }
 0x6b7   :  { %v748_v16 = vsel %vm604_vm7, %v735_v54, %v747_v12 }
 0x6b8   :  { %v708_v50 = vpop.permute.xlu0 %707 }
 0x6b9   :  { %v739_v3 = vrot.slane %v708_v50, %v1810_v15 }
 0x6bb   :  { %v749_v18 = vsel %vm606_vm8, %v739_v3, %v748_v16 }
 0x6bc   :  { %v711_v14 = vpop.permute.xlu0 %710 }
 0x6bd   :  { %v743_v17 = vrot.slane %v711_v14, %v1810_v15 }
 0x6bf   :  { %v750_v19 = vsel %vm608_vm9, %v743_v17, %v749_v18 }
 0x6c0   :  { %v752_v46 = vsel %vm611_vm10, %v750_v19, 0.0 }
 0x6c1   :  { %753 = vadd.xlane.f32.xlu0 %v752_v46 }
 0x74e   :  { %v754_v62 = vpop.xlane.xlu0 %753 }
 0x74f   :  { %v779_v51 = vrot.slane %v754_v62, %v1724_v11  ;;  %v759_v21 = vrot.slane %v754_v62, %v1703_v2  ;;  %v763_v53 = vrot.slane %v754_v62, %v1690_v60  ;;  %v767_v55 = vrot.slane %v754_v62, %v1714_v7 }
 0x750   :  { %v771_v58 = vrot.slane %v754_v62, %v1719_v9  ;;  %v775_v59 = vrot.slane %v754_v62, %v1693_v61  ;;  %v783_v32 = vrot.slane %v754_v62, %v1759_v37 }
 0x751   :  { %1401 = vrcp.f32 %v779_v51 }
 0x752   :  { %1403 = vrcp.f32 %v759_v21 }
 0x753   :  { %1405 = vrcp.f32 %v763_v53 }
 0x754   :  { %1407 = vrcp.f32 %v767_v55 }
 0x755   :  { %1409 = vrcp.f32 %v771_v58 }
 0x756   :  { %1411 = vrcp.f32 %v775_v59 }
 0x757   :  { %1413 = vrcp.f32 %v783_v32 }
 0x75b   :  { %v1402_v57 = vpop.eup %1401 }
 0x75c   :  { %v1404_v25 = vpop.eup %1403  ;;  %v807_v28 = vmul.f32 %v1402_v57, %v1396_v8  ;;  %v787_v8 = vrot.slane %v754_v62, %v1754_v35 }
 0x75d   :  { %v1406_v29 = vpop.eup %1405  ;;  %v797_v30 = vmul.f32 %v1404_v25, %v1838_v20 }
 0x75e   :  { %v1888_v31 = vmul.f32 %v807_v28, %v1773_v44  ;;  %v799_v36 = vmul.f32 %v1406_v29, %v1843_v22  ;;  %v1408_v38 = vpop.eup %1407  ;;  %1415 = vrcp.f32 %v787_v8 }
 0x75f   :  { %v1892_v33 = vmul.f32 %v797_v30, %v1763_v39  ;;  %v801_v44 = vmul.f32 %v1408_v38, %v1848_v23  ;;  %v1410_v45 = vpop.eup %1409 }
 0x760   :  { %844 = vperm.xlu0 %1359, %v1888_v31   ;;  %v1899_v20 = vmul.f32 %v799_v36, %v1767_v41  ;;  %v803_v22 = vmul.f32 %v1410_v45, %v1852_v24  ;;  %v1412_v47 = vpop.eup %1411 }
 0x761   :  { %829 = vperm.xlu1 %1360, %v1892_v33   ;;  %v1904_v39 = vmul.f32 %v801_v44, %v1765_v40  ;;  %v805_v41 = vmul.f32 %v1412_v47, %v1855_v26  ;;  %v1414_v50 = vpop.eup %1413 }
 0x762   :  { %v1909_v48 = vmul.f32 %v803_v22, %v1769_v42  ;;  %v809_v52 = vmul.f32 %v1414_v50, %v1858_v27 }
 0x763   :  { %v1914_v23 = vmul.f32 %v805_v41, %v1771_v43 }
 0x764   :  { %v1919_v24 = vmul.f32 %v809_v52, %v1802_v6 }
 0x765   :  { %832 = vperm.xlu1 %1360, %v1899_v20  }
 0x768   :  { %v1416_v40 = vpop.eup %1415 }
 0x769   :  { %835 = vperm.xlu1 %1360, %v1904_v39   ;;  %v811_v54 = vmul.f32 %v1416_v40, %v1861_v4  ;;  %v109_v40 = vld [vmem:[#allocation7 + $0xa8] sm:$0xff] }
 0x76b   :  { %v819_v42 = vmul.f32 %v811_v54, %v1795_v63 }
 0x76d   :  { %838 = vperm.xlu1 %1360, %v1909_v48  }
 0x771   :  { %841 = vperm.xlu1 %1360, %v1914_v23  }
 0x775   :  { %847 = vperm.xlu1 %1360, %v1919_v24  }
 0x779   :  { %850 = vperm.xlu1 %1360, %v819_v42  }
 0x7df   :  { %v845_v17 = vpop.permute.xlu0 %844 }
 0x7e0   :  { %v830_v26 = vpop.permute.xlu1 %829  ;;  %v875_v51 = vrot.slane %v845_v17, %v1810_v15 }
 0x7e1   :  { %v855_v14 = vrot.slane %v830_v26, %v1810_v15 }
 0x7e4   :  { %v833_v56 = vpop.permute.xlu1 %832 }
 0x7e5   :  { %v859_v10 = vrot.slane %v833_v56, %v1810_v15  ;;  %v113_v56 = vld [vmem:[#allocation7 + $0xc8] sm:$0xff] }
 0x7e7   :  { %v884_v16 = vsel %vm596_vm3, %v859_v10, %v855_v14  ;;  %v118_v14 = vld [vmem:[#allocation7 + $0xf0] sm:$0xff] }
 0x7e8   :  { %v836_v3 = vpop.permute.xlu1 %835 }
 0x7e9   :  { %v863_v27 = vrot.slane %v836_v3, %v1810_v15 }
 0x7eb   :  { %v885_v63 = vsel %vm598_vm4, %v863_v27, %v884_v16  ;;  %v117_v27 = vld [vmem:[#allocation7 + $0xe8] sm:$0xff] }
 0x7ec   :  { %v839_v43 = vpop.permute.xlu1 %838  ;;  %v121_v16 = vld [vmem:[#allocation7 + $0x108] sm:$0xff] }
 0x7ed   :  { %v867_v6 = vrot.slane %v839_v43, %v1810_v15  ;;  %v115_v43 = vld [vmem:[#allocation7 + $0xd8] sm:$0xff] }
 0x7ef   :  { %v886_v19 = vsel %vm600_vm5, %v867_v6, %v885_v63  ;;  %v119_v6 = vld [vmem:[#allocation7 + $0xf8] sm:$0xff]  ;;  %v122_v63 = vld [vmem:[#allocation7 + $0x110] sm:$0xff] }
 0x7f0   :  { %v842_v12 = vpop.permute.xlu1 %841 }
 0x7f1   :  { %v871_v4 = vrot.slane %v842_v12, %v1810_v15 }
 0x7f3   :  { %v887_v46 = vsel %vm602_vm6, %v871_v4, %v886_v19  ;;  %v1337_v4 = vpack.c.bf16 %v119_v6, %v118_v14 }
 0x7f4   :  { %v848_v18 = vpop.permute.xlu1 %847  ;;  %v888_v55 = vsel %vm604_vm7, %v875_v51, %v887_v46  ;;  %v72_v46 = vld [vmem:[%s2035_s2 + $0x8] sm:$0xff] }
 0x7f5   :  { %v879_v62 = vrot.slane %v848_v18, %v1810_v15  ;;  %v123_v18 = vld [vmem:[#allocation7 + $0x118] sm:$0xff] }
 0x7f6   :  { %v1343_v19 = vpack.c.bf16 %v123_v18, %v122_v63 }
 0x7f7   :  { %v889_v58 = vsel %vm606_vm8, %v879_v62, %v888_v55  ;;  %v71_v62 = vld [vmem:[%s2035_s2] sm:$0xff]  ;;  %v73_v55 = vld [vmem:[%s2035_s2 + $0x10] sm:$0xff] }
 0x7f8   :  { %v851_v21 = vpop.permute.xlu1 %850 }
 0x7f9   :  { %v883_v53 = vrot.slane %v851_v21, %v1810_v15 }
 0x7fb   :  { %v890_v59 = vsel %vm608_vm9, %v883_v53, %v889_v58 }
 0x7fc   :  { %v892_v57 = vsel %vm611_vm10, %v890_v59, 0.0  ;;  %v78_v59 = vld [vmem:[%s2035_s2 + $0x38] sm:$0xff] }
 0x7fd   :  { %893 = vadd.xlane.f32.xlu1 %v892_v57 }
 0x88a   :  { %v894_v25 = vpop.xlane.xlu1 %893 }
 0x88b   :  { %v895_v28 = vadd.f32 1e-13, %v894_v25 }
 0x88d   :  { %v928_v29 = vrot.slane %v895_v28, %v1754_v35  ;;  %v900_v30 = vrot.slane %v895_v28, %v1703_v2  ;;  %v904_v32 = vrot.slane %v895_v28, %v1690_v60  ;;  %v908_v15 = vrot.slane %v895_v28, %v1714_v7 }
 0x88e   :  { %v912_v36 = vrot.slane %v895_v28, %v1719_v9  ;;  %v916_v45 = vrot.slane %v895_v28, %v1693_v61  ;;  %v920_v60 = vrot.slane %v895_v28, %v1724_v11  ;;  %v924_v9 = vrot.slane %v895_v28, %v1759_v37  ;;  %v108_v11 = vld [vmem:[#allocation7 + $0xa0] sm:$0xff] }
 0x88f   :  { %1417 = vrcp.f32 %v928_v29  ;;  %v74_v29 = vld [vmem:[%s2035_s2 + $0x18] sm:$0xff] }
 0x890   :  { %1419 = vrcp.f32 %v900_v30 }
 0x891   :  { %1421 = vrcp.f32 %v904_v32 }
 0x892   :  { %1423 = vrcp.f32 %v908_v15 }
 0x893   :  { %1425 = vrcp.f32 %v912_v36 }
 0x894   :  { %1427 = vrcp.f32 %v916_v45  ;;  %v75_v45 = vld [vmem:[%s2035_s2 + $0x20] sm:$0xff] }
 0x895   :  { %1429 = vrcp.f32 %v920_v60 }
 0x896   :  { %1431 = vrcp.f32 %v924_v9 }
 0x899   :  { %v1418_v38 = vpop.eup %1417 }
 0x89a   :  { %v1420_v8 = vpop.eup %1419  ;;  %v952_v44 = vmul.f32 %v1418_v38, %v819_v42  ;;  %v111_v42 = vld [vmem:[#allocation7 + $0xb8] sm:$0xff] }
 0x89b   :  { %v938_v35 = vmul.f32 %v1420_v8, %v1892_v33  ;;  %v1422_v22 = vpop.eup %1421 }
 0x89c   :  { %990 = vperm.xlu1 %1360, %v952_v44   ;;  %v940_v2 = vmul.f32 %v1422_v22, %v1899_v20  ;;  %v1424_v7 = vpop.eup %1423  ;;  %v1322_v20 = vpack.c.bf16 %v109_v40, %v108_v11 }
 0x89d   :  { %955 = vperm.xlu0 %1359, %v938_v35   ;;  %v942_v47 = vmul.f32 %v1424_v7, %v1904_v39  ;;  %v1426_v41 = vpop.eup %1425  ;;  %v110_v39 = vld [vmem:[#allocation7 + $0xb0] sm:$0xff] }
 0x89e   :  { %v944_v61 = vmul.f32 %v1426_v41, %v1909_v48  ;;  %v1428_v33 = vpop.eup %1427  ;;  %1323 = vmatpush3.bf16.msra.mxu1 %v1322_v20  ;;  %v1325_v26 = vpack.c.bf16 %v111_v42, %v110_v39 }
 0x89f   :  { %v946_v50 = vmul.f32 %v1428_v33, %v1914_v23  ;;  %v1430_v52 = vpop.eup %1429  ;;  %1324 = vmatprep.subr.bf16.mxu1 %v1540_v0  ;;  %v112_v23 = vld [vmem:[#allocation7 + $0xc0] sm:$0xff] }
 0x8a0   :  { %v948_v54 = vmul.f32 %v1430_v52, %v1888_v31  ;;  %v1432_v37 = vpop.eup %1431  ;;  %v1328_v3 = vpack.c.bf16 %v113_v56, %v112_v23  ;;  %v114_v31 = vld [vmem:[#allocation7 + $0xd0] sm:$0xff]  ;;  %v76_v33 = vld [vmem:[%s2035_s2 + $0x28] sm:$0xff] }
 0x8a1   :  { %960 = vperm.xlu0 %1359, %v940_v2   ;;  %v950_v48 = vmul.f32 %v1432_v37, %v1919_v24  ;;  %v1331_v10 = vpack.c.bf16 %v115_v43, %v114_v31  ;;  %v116_v24 = vld [vmem:[#allocation7 + $0xe0] sm:$0xff] }
 0x8a2   :  { %1326 = vmatpush3.bf16.msra.mxu1 %v1325_v26  ;;  %v1334_v12 = vpack.c.bf16 %v117_v27, %v116_v24 }
 0x8a3   :  { %1327 = vmatprep.subr.bf16.mxu1 %v1540_v0 }
 0x8a5   :  { %965 = vperm.xlu0 %1359, %v942_v47  }
 0x8a6   :  { %1329 = vmatpush3.bf16.msra.mxu1 %v1328_v3 }
 0x8a7   :  { %1330 = vmatprep.subr.bf16.mxu1 %v1540_v0 }
 0x8a9   :  { %970 = vperm.xlu0 %1359, %v944_v61  }
 0x8aa   :  { %1332 = vmatpush3.bf16.msra.mxu1 %v1331_v10 }
 0x8ab   :  { %1333 = vmatprep.subr.bf16.mxu1 %v1540_v0 }
 0x8ad   :  { %975 = vperm.xlu0 %1359, %v946_v50  }
 0x8ae   :  { %1335 = vmatpush3.bf16.msra.mxu1 %v1334_v12 }
 0x8af   :  { %1336 = vmatprep.subr.bf16.mxu1 %v1540_v0 }
 0x8b1   :  { %980 = vperm.xlu0 %1359, %v948_v54  }
 0x8b2   :  { %1338 = vmatpush3.bf16.msra.mxu1 %v1337_v4 }
 0x8b3   :  { %1339 = vmatprep.subr.bf16.mxu1 %v1540_v0 }
 0x8b5   :  { %985 = vperm.xlu0 %1359, %v950_v48   ;;  %v77_v48 = vld [vmem:[%s2035_s2 + $0x30] sm:$0xff] }
 0x8b9   :  { %1074 = vrot.lane.b32.xlu0 %v1707_v5, %s1541_s21  ;;  %v120_v5 = vld [vmem:[#allocation7 + $0x100] sm:$0xff] }
 0x8ba   :  { %v1340_v17 = vpack.c.bf16 %v121_v16, %v120_v5 }
 0x8bc   :  { %1341 = vmatpush3.bf16.msra.mxu1 %v1340_v17 }
 0x8bd   :  { %1077 = vrot.lane.b32.xlu0 %v1638_v1, %s1543_s0  ;;  %1342 = vmatprep.subr.bf16.mxu1 %v1540_v0 }
 0x8c0   :  { %1344 = vmatpush3.bf16.msra.mxu1 %v1343_v19 }
 0x91b   :  { %v991_v57 = vpop.permute.xlu1 %990 }
 0x91c   :  { %v956_v1 = vpop.permute.xlu0 %955  ;;  %v1000_v15 = vmul.f32 %v991_v57, %v78_v59 }
 0x91d   :  { %v993_v53 = vmul.f32 %v956_v1, %v71_v62 }
 0x91e   :  { %v1051_v60 = vsel %vm1001_vm11, %v1000_v15, 0.0 }
 0x91f   :  { %v1002_v28 = vsel %vm1001_vm11, %v993_v53, 0.0  ;;  %v1052_v50 = vrot.slane %v1051_v60, 4 }
 0x920   :  { %v961_v51 = vpop.permute.xlu0 %960  ;;  %v1003_v8 = vrot.slane %v1002_v28, 4 }
 0x921   :  { %v994_v21 = vmul.f32 %v961_v51, %v72_v46  ;;  %v1053_v23 = vadd.f32 %v1052_v50, %v1051_v60 }
 0x922   :  { %v1004_v47 = vadd.f32 %v1003_v8, %v1002_v28 }
 0x923   :  { %v1009_v0 = vsel %vm1001_vm11, %v994_v21, 0.0  ;;  %v1054_v5 = vrot.slane %v1053_v23, 2 }
 0x924   :  { %v966_v58 = vpop.permute.xlu0 %965  ;;  %v1010_v30 = vrot.slane %v1009_v0, 4  ;;  %v1005_v37 = vrot.slane %v1004_v47, 2 }
 0x925   :  { %v995_v25 = vmul.f32 %v966_v58, %v73_v55  ;;  %v1055_v53 = vadd.f32 %v1054_v5, %v1053_v23 }
 0x926   :  { %v1011_v35 = vadd.f32 %v1010_v30, %v1009_v0  ;;  %v1006_v27 = vadd.f32 %v1005_v37, %v1004_v47 }
 0x927   :  { %v1016_v32 = vsel %vm1001_vm11, %v995_v25, 0.0  ;;  %v1056_v30 = vrot.slane %v1055_v53, 1 }
 0x928   :  { %v1017_v36 = vrot.slane %v1016_v32, 4  ;;  %v971_v38 = vpop.permute.xlu0 %970  ;;  %v1012_v52 = vrot.slane %v1011_v35, 2  ;;  %v1007_v1 = vrot.slane %v1006_v27, 1 }
 0x929   :  { %v996_v44 = vmul.f32 %v971_v38, %v74_v29 }
 0x92a   :  { %v1018_v2 = vadd.f32 %v1017_v36, %v1016_v32  ;;  %v1013_v56 = vadd.f32 %v1012_v52, %v1011_v35  ;;  %v1008_v57 = vadd.f32 %v1007_v1, %v1006_v27 }
 0x92b   :  { %v1023_v22 = vsel %vm1001_vm11, %v996_v44, 0.0 }
 0x92c   :  { %v1024_v7 = vrot.slane %v1023_v22, 4  ;;  %v976_v9 = vpop.permute.xlu0 %975  ;;  %v1019_v40 = vrot.slane %v1018_v2, 2  ;;  %v1014_v16 = vrot.slane %v1013_v56, 1 }
 0x92d   :  { %v997_v41 = vmul.f32 %v976_v9, %v75_v45 }
 0x92e   :  { %v1025_v61 = vadd.f32 %v1024_v7, %v1023_v22  ;;  %v1020_v31 = vadd.f32 %v1019_v40, %v1018_v2  ;;  %v1015_v55 = vadd.f32 %v1014_v16, %v1013_v56  ;;  %v1057_v22 = vadd.f32 %v1056_v30, %v1055_v53 }
 0x92f   :  { %v1030_v11 = vsel %vm1001_vm11, %v997_v41, 0.0 }
 0x930   :  { %v1031_v20 = vrot.slane %v1030_v11, 4  ;;  %v981_v54 = vpop.permute.xlu0 %980  ;;  %v1026_v39 = vrot.slane %v1025_v61, 2  ;;  %v1021_v63 = vrot.slane %v1020_v31, 1  ;;  %v1066_v32 = vsel %vm596_vm3, %v1015_v55, %v1008_v57 }
 0x931   :  { %v998_v42 = vmul.f32 %v981_v54, %v76_v33 }
 0x932   :  { %v1032_v26 = vadd.f32 %v1031_v20, %v1030_v11  ;;  %v1027_v12 = vadd.f32 %v1026_v39, %v1025_v61  ;;  %v1022_v0 = vadd.f32 %v1021_v63, %v1020_v31  ;;  %v1215_v61 = vld [vmem:[%s2039_s6 + $0x1] ss:$0 sm:$0xff]  ;;  %s1548_s6 = smov [#allocation8]  }
 0x933   :  { %v1037_v3 = vsel %vm1001_vm11, %v998_v42, 0.0  ;;  %s1200_s29 = sshll.u32 %s1548_s6, 4  ;;  %s1201_s29 = int_to_ptr.vmem [resolvable:$true] %s1200_s29 }
 0x934   :  { %v1033_v43 = vrot.slane %v1032_v26, 2  ;;  %v1038_v10 = vrot.slane %v1037_v3, 4  ;;  %v986_v24 = vpop.permute.xlu0 %985  ;;  %v1028_v46 = vrot.slane %v1027_v12, 1  ;;  %v1067_v36 = vsel %vm598_vm4, %v1022_v0, %v1066_v32  ;;  %p1512_p11 = scmp.lt.s32.totalorder %s1201_s29, %s1201_s29 }
 0x935   :  { %v999_v14 = vmul.f32 %v986_v24, %v77_v48 }
 0x936   :  { %v1034_v6 = vadd.f32 %v1033_v43, %v1032_v26  ;;  %v1039_v4 = vadd.f32 %v1038_v10, %v1037_v3  ;;  %v1029_v25 = vadd.f32 %v1028_v46, %v1027_v12  ;;  %v1190_v43 = vsel %vm143_vm0, %v1728_v13, %v1667_v49 }
 0x937   :  { %v1044_v17 = vsel %vm1001_vm11, %v999_v14, 0.0 }
 0x938   :  { %v1040_v18 = vrot.slane %v1039_v4, 2  ;;  %v1045_v19 = vrot.slane %v1044_v17, 4  ;;  %v1035_v62 = vrot.slane %v1034_v6, 1  ;;  %v1075_v8 = vpop.permute.xlu0 %1074  ;;  %v1068_v44 = vsel %vm600_vm5, %v1029_v25, %v1067_v36 }
 0x93a   :  { %v1041_v51 = vadd.f32 %v1040_v18, %v1039_v4  ;;  %v1046_v21 = vadd.f32 %v1045_v19, %v1044_v17  ;;  %v1036_v28 = vadd.f32 %v1035_v62, %v1034_v6 }
 0x93c   :  { %v1042_v58 = vrot.slane %v1041_v51, 1  ;;  %v1047_v59 = vrot.slane %v1046_v21, 2  ;;  %v1069_v35 = vsel %vm602_vm6, %v1036_v28, %v1068_v44  ;;  %v1078_v7 = vpop.permute.xlu0 %1077 }
 0x93e   :  { %v1048_v29 = vadd.f32 %v1047_v59, %v1046_v21  ;;  %v1043_v15 = vadd.f32 %v1042_v58, %v1041_v51 }
 0x940   :  { %v1049_v38 = vrot.slane %v1048_v29, 1  ;;  %v1070_v60 = vsel %vm604_vm7, %v1043_v15, %v1069_v35 }
 0x942   :  { %v1050_v45 = vadd.f32 %v1049_v38, %v1048_v29 }
 0x944   :  { %v1071_v2 = vsel %vm606_vm8, %v1050_v45, %v1070_v60 }
 0x945   :  { %v1072_v9 = vsel %vm608_vm9, %v1057_v22, %v1071_v2 }
 0x946   :  { %v1080_v47 = vsel %vm1001_vm11, %v1072_v9, %v1075_v8 }
 0x947   :  { %v1081_v41 = vsel %vm137_vm1, %v1080_v47, %v1078_v7 }
 0x948   :  { %1283 = vmatmul.mubr.f32.vlgmr.msra.gmra.mrb[2].mxu1 %v1081_v41 }
 0xa1b   :  { %v1152_v33 = vpop.f32.mrb[2].mxu1 }
 0xa1c   :  { %v1153_v50 = vadd.f32 %v1215_v61, %v1152_v33  ;;  %v1284_v52 = vpop.f32.mrb[3].mxu1 }
 0xa1e   :  { %1433 = vtanh.f32 %v1153_v50  ;;  %v1216_v40 = vmul.f32 -1.442695, %v1153_v50 }
 0xa20   :  { %1435 = vpow2.f32 %v1216_v40 }
 0xa28   :  { %v1434_v11 = vpop.eup %1433 }
 0xa29   :  { %1166 = vrot.lane.b32.xlu0 %v1434_v11, %s1542_s5 }
 0xa2a   :  { %v1436_v20 = vpop.eup %1435 }
 0xa2b   :  { %v1159_v54 = vadd.f32 1.0, %v1436_v20 }
 0xa2d   :  { %1437 = vrcp.f32 %v1159_v54 }
 0xa37   :  { %v1438_v37 = vpop.eup %1437 }
 0xa38   :  { %v1164_v26 = vmul.f32 %v1438_v37, %v1656_v34 }
 0xa9b   :  { %v1167_v39 = vpop.permute.xlu0 %1166 }
 0xa9c   :  { %v1169_v42 = vmul.f32 %v1438_v37, %v1167_v39 }
 0xa9e   :  { %1171 = vrot.lane.b32.xlu0 %v1169_v42, %s1543_s0  ;;  %s1507_s0 = scalar_lea.vmem %s1201_s29, 128 }
 0xa9f   :  { %p1508_p10 = scmp.ne.s32.totalorder %s1201_s29, %s1507_s0  ;;  %p1513_p12 = scmp.lt.s32.totalorder %s1507_s0, %s1507_s0 }
 0xaa1   :  { %p1514_p13 = por %p1513_p12, %p1512_p11 }
 0xaa3   :  { %p1515_p0 = pnand %p1514_p13, %p1508_p10 }
 0xb10   :  { %v1172_v48 = vpop.permute.xlu0 %1171 }
 0xb11   :  { %v1174_v23 = vadd.f32 %v1172_v48, %v1164_v26 }
 0xb13   :  { %1439 = vtanh.f32 %v1174_v23 }
 0xb1d   :  { %v1440_v56 = vpop.eup %1439 }
 0xb1e   :  { %1177 = vrot.lane.b32.xlu1 %v1440_v56, %s1542_s5 }
 0xb22   :  { %1187 = vrot.lane.b32.xlu1 %v1174_v23, %s1542_s5 }
 0xb90   :  { %v1178_v3 = vpop.permute.xlu1 %1177 }
 0xb91   :  { %v1180_v31 = vmul.f32 %v1438_v37, %v1178_v3 }
 0xb93   :  { %1183 = vrot.lane.b32.xlu0 %v1180_v31, %s1541_s21 }
 0xb94   :  { %v1188_v34 = vpop.permute.xlu1 %1187 }
 0xc05   :  { %v1184_v10 = vpop.permute.xlu0 %1183 }
 0xc06   :  { %v1191_v24 = vsel %vm1001_vm11, %v1190_v43, %v1184_v10 }
 0xc07   :  { %v1192_v27 = vsel %vm137_vm1, %v1191_v24, %v1188_v34 }
 0xc08   :  { %1193 = vst [vmem:[#allocation8] sm:$0xff] %v1192_v27 }
 0xc09   :  { %1518 = shalt.err (!%p1515_p0)
}
 0xc0a   :  { %s1519_s30 = scalar_lea.hbm %s2041_s8, 128 }
 0xc0b   :  { %p1520_p1 = scmp.ne.s32.totalorder %s2041_s8, %s1519_s30  ;;  %p1523_p2 = scmp.lt.u32.totalorder %s1519_s30, %s2041_s8 }
 0xc0d   :  { %p1525_p3 = pnand %p1523_p2, %p1520_p1 }
 0xc0f   :  { %1528 = shalt.err (!%p1525_p3)
}
 0xc10   :  { %1203 = dma.vmem_to_hbm [thread:$0]  %s1201_s29, 128, %s2041_s8, [#allocation4]  }
 0xc11   :  { %1533 = dma.done.wait [#allocation4], 128  }
 0xc12   :  { %1534 = vsyncadd [#allocation4], 4294967168 }
 0xc13   :  { %1207 = vsyncpa [#allocation3], 1 }
 0xc14   :  { %1208 = vsyncpa [#allocation6], 1 }
 0xc15   :  { %1209 = vsyncpa [#allocation4], 1 }

</bundles_post_ra>
